<compile_context>
chip_gen: v6e
topology: v6e:2x2x1
jax: 0.10.0
libtpu: 0.0.40
codegen_flags: <defaults>
</compile_context>

<pallas_src>
import jax
import jax.numpy as jnp
from jax import lax
from jax.experimental import pallas as pl
from jax.experimental.pallas import tpu as pltpu

_EPS = 1e-8
_SUBLANE = 8
# f32-intermediate headroom per row (syn, sum_others up-casts + product temps).
_INTERMEDIATE_F32_ROWS = 6


def _make_synergy_kernel(num_others):
    """Builds a kernel taking (syn_ref, other_ref_0..K-1, out_ref)."""

    def kernel(syn_ref, *rest):
        other_refs = rest[:num_others]
        out_ref = rest[num_others]

        # Up-cast to f32 before any arithmetic (portable to v5e).
        syn = syn_ref[...].astype(jnp.float32)                       # [TB, D]
        sum_others = other_refs[0][...].astype(jnp.float32)          # [TB, D]
        for r in other_refs[1:]:
            sum_others = sum_others + r[...].astype(jnp.float32)

        dot = jnp.sum(syn * sum_others, axis=-1, keepdims=True)      # [TB, 1]
        ss_syn = jnp.sum(syn * syn, axis=-1, keepdims=True)          # [TB, 1]
        ss_oth = jnp.sum(sum_others * sum_others, axis=-1, keepdims=True)

        eps_sq = jnp.float32(_EPS) * jnp.float32(_EPS)
        # |cos| = |dot| / (max(||x||,eps) * max(||y||,eps))
        #       = |dot| * rsqrt(max(ss_x, eps^2) * max(ss_y, eps^2))
        inv = lax.rsqrt(jnp.maximum(ss_syn, eps_sq) * jnp.maximum(ss_oth, eps_sq))
        out_ref[...] = jnp.abs(dot) * inv                            # [TB, 1]

    return kernel


def _vmem_budgets():
    """Generation-aware (input_budget_bytes, vmem_limit_bytes)."""
    try:
        cap = int(pltpu.get_tpu_info().vmem_capacity_bytes)
    except Exception:
        cap = 64 * 1024 * 1024  # conservative fallback (v7x-sized)
    if cap >= 100 * 1024 * 1024:
        # 128 MiB parts (v5e / v6e): big steps to amortize per-step overhead.
        return 56 * 1024 * 1024, 104 * 1024 * 1024
    # 64 MiB parts (v7x): leave headroom for intermediates + output buffers.
    return 22 * 1024 * 1024, 44 * 1024 * 1024


def _round_down_8(n):
    return max((n // _SUBLANE) * _SUBLANE, _SUBLANE)


def _pick_tile_rows(B, D, num_inputs, input_itemsize, input_budget):
    """Byte-targeted row tile: biggest tb whose double-buffered native-dtype
    input DMAs (+ f32 intermediate headroom) fit the VMEM input budget, with
    a >=2-4-step guarantee for non-trivial B."""
    per_row_bytes = (2 * num_inputs * D * input_itemsize          # pipelined inputs
                     + _INTERMEDIATE_F32_ROWS * D * 4)            # f32 temps headroom
    cap = max(input_budget // per_row_bytes, _SUBLANE)

    if B <= cap:
        if B <= 64:
            # Tiny problem: a single full-array tile keeps launch overhead minimal.
            return B
        # Guarantee >= ~4 grid steps so v7x's 2 TCs can split the work and the
        # prologue DMA overlaps with compute on all generations.
        return min(_round_down_8(pl.cdiv(B, 4)), _round_down_8(cap))

    return _round_down_8(cap)


def synergy_loss(synergy_repr, other_components):
    """synergy_repr: [B, D]; other_components: list of [B, D] arrays."""
    B, D = synergy_repr.shape
    K = len(other_components)
    assert K >= 1, "SynergyLoss needs at least one other component"

    input_budget, vmem_limit = _vmem_budgets()
    itemsize = max(
        [jnp.dtype(synergy_repr.dtype).itemsize]
        + [jnp.dtype(o.dtype).itemsize for o in other_components]
    )
    tb = _pick_tile_rows(B, D, K + 1, itemsize, input_budget)
    grid = (pl.cdiv(B, tb),)

    row_spec = pl.BlockSpec((tb, D), lambda i: (i, 0))   # D stays on the lane axis
    out_spec = pl.BlockSpec((tb, 1), lambda i: (i, 0))

    abs_cos = pl.pallas_call(
        _make_synergy_kernel(K),
        out_shape=jax.ShapeDtypeStruct((B, 1), jnp.float32),
        grid=grid,
        in_specs=[row_spec] * (K + 1),
        out_specs=out_spec,
        compiler_params=pltpu.CompilerParams(
            dimension_semantics=("parallel",),
            vmem_limit_bytes=vmem_limit,
        ),
    )(synergy_repr, *other_components)

    # Tiny final reduction (B floats) done in XLA.
    return jnp.mean(abs_cos)


def _reference(synergy_repr, other_components):
    sum_others = jnp.sum(jnp.stack(other_components, axis=0), axis=0)
    x = synergy_repr.astype(jnp.float32)
    y = sum_others.astype(jnp.float32)
    dot = jnp.sum(x * y, axis=-1)
    nx = jnp.maximum(jnp.linalg.norm(x, axis=-1), _EPS)
    ny = jnp.maximum(jnp.linalg.norm(y, axis=-1), _EPS)
    return jnp.mean(jnp.abs(dot / (nx * ny)))


if __name__ == "__main__":
    key = jax.random.PRNGKey(0)

    # Small case (single tile path).
    B, D, K = 8, 128, 3  # batch, feature dim, number of other PID components
    k_syn, *k_others = jax.random.split(key, K + 1)
    synergy_repr = jax.random.normal(k_syn, (B, D), dtype=jnp.float32)
    other_components = [
        jax.random.normal(k, (B, D), dtype=jnp.float32) for k in k_others
    ]
    loss = jax.block_until_ready(synergy_loss(synergy_repr, other_components))
    ref = _reference(synergy_repr, other_components)
    assert jnp.allclose(loss, ref, atol=1e-5, rtol=1e-5), (loss, ref)

    # Slightly larger case to exercise the multi-step grid + partial last tile.
    B2 = 200
    k2 = jax.random.PRNGKey(1)
    k_syn2, *k_others2 = jax.random.split(k2, K + 1)
    syn2 = jax.random.normal(k_syn2, (B2, D), dtype=jnp.float32)
    others2 = [jax.random.normal(k, (B2, D), dtype=jnp.float32) for k in k_others2]
    loss2 = jax.block_until_ready(synergy_loss(syn2, others2))
    ref2 = _reference(syn2, others2)
    assert jnp.allclose(loss2, ref2, atol=1e-5, rtol=1e-5), (loss2, ref2)

    print("KERNEL_OK")
</pallas_src>

<mosaic_0001>
module attributes {stable_mosaic.version = 11 : i64} {
  func.func @kernel(%arg0: i32, %arg1: memref<8x128xf32, #tpu.memory_space<vmem>>, %arg2: memref<8x128xf32, #tpu.memory_space<vmem>>, %arg3: memref<8x128xf32, #tpu.memory_space<vmem>>, %arg4: memref<8x128xf32, #tpu.memory_space<vmem>>, %arg5: memref<8x1xf32, #tpu.memory_space<vmem>>) attributes {dimension_semantics = [#tpu.dimension_semantics<parallel>], iteration_bounds = array<i64: 1>, scalar_prefetch = 0 : i64, scratch_operands = 0 : i64, tpu.core_type = #tpu.core_type<tc>, window_params = [{transform_indices = @transform_0, window_bounds = array<i64: 8, 128>}, {transform_indices = @transform_1, window_bounds = array<i64: 8, 128>}, {transform_indices = @transform_2, window_bounds = array<i64: 8, 128>}, {transform_indices = @transform_3, window_bounds = array<i64: 8, 128>}, {transform_indices = @transform_4, window_bounds = array<i64: 8, 1>}]} {
    %c0 = arith.constant 0 : index
    %c0_0 = arith.constant 0 : index
    %0 = vector.load %arg1[%c0, %c0_0] : memref<8x128xf32, #tpu.memory_space<vmem>>, vector<8x128xf32>
    %c0_1 = arith.constant 0 : index
    %c0_2 = arith.constant 0 : index
    %1 = vector.load %arg2[%c0_1, %c0_2] : memref<8x128xf32, #tpu.memory_space<vmem>>, vector<8x128xf32>
    %c0_3 = arith.constant 0 : index
    %c0_4 = arith.constant 0 : index
    %2 = vector.load %arg3[%c0_3, %c0_4] : memref<8x128xf32, #tpu.memory_space<vmem>>, vector<8x128xf32>
    %3 = arith.addf %1, %2 : vector<8x128xf32>
    %c0_5 = arith.constant 0 : index
    %c0_6 = arith.constant 0 : index
    %4 = vector.load %arg4[%c0_5, %c0_6] : memref<8x128xf32, #tpu.memory_space<vmem>>, vector<8x128xf32>
    %5 = arith.addf %3, %4 : vector<8x128xf32>
    %6 = arith.mulf %0, %5 : vector<8x128xf32>
    %cst = arith.constant dense<0.000000e+00> : vector<8xf32>
    %7 = vector.multi_reduction <add>, %6, %cst [1] : vector<8x128xf32> to vector<8xf32>
    %8 = vector.shape_cast %7 : vector<8xf32> to vector<8x1xf32>
    %9 = arith.mulf %0, %0 : vector<8x128xf32>
    %cst_7 = arith.constant dense<0.000000e+00> : vector<8xf32>
    %10 = vector.multi_reduction <add>, %9, %cst_7 [1] : vector<8x128xf32> to vector<8xf32>
    %11 = vector.shape_cast %10 : vector<8xf32> to vector<8x1xf32>
    %12 = arith.mulf %5, %5 : vector<8x128xf32>
    %cst_8 = arith.constant dense<0.000000e+00> : vector<8xf32>
    %13 = vector.multi_reduction <add>, %12, %cst_8 [1] : vector<8x128xf32> to vector<8xf32>
    %14 = vector.shape_cast %13 : vector<8xf32> to vector<8x1xf32>
    %cst_9 = arith.constant 9.99999993E-9 : f32
    %cst_10 = arith.constant 9.99999993E-9 : f32
    %15 = arith.mulf %cst_9, %cst_10 : f32
    %16 = vector.broadcast %15 : f32 to vector<8x1xf32>
    %17 = arith.maximumf %11, %16 : vector<8x1xf32>
    %18 = vector.broadcast %15 : f32 to vector<8x1xf32>
    %19 = arith.maximumf %14, %18 : vector<8x1xf32>
    %20 = arith.mulf %17, %19 : vector<8x1xf32>
    %21 = math.rsqrt %20 : vector<8x1xf32>
    %22 = math.absf %8 : vector<8x1xf32>
    %23 = arith.mulf %22, %21 : vector<8x1xf32>
    %c0_11 = arith.constant 0 : index
    %c0_12 = arith.constant 0 : index
    %24 = vector.load %arg5[%c0_11, %c0_12] : memref<8x1xf32, #tpu.memory_space<vmem>>, vector<8x1xf32>
    tpu.vector_store %arg5[%c0_11, %c0_12], %23 {strides = array<i32>} : memref<8x1xf32, #tpu.memory_space<vmem>>, vector<8x1xf32>,
    return
  }
  func.func @transform_0(%arg0: i32) -> (i32, i32) {
    %c0_i32 = arith.constant 0 : i32
    %c0_i32_0 = arith.constant 0 : i32
    return %arg0, %c0_i32 : i32, i32
  }
  func.func @transform_1(%arg0: i32) -> (i32, i32) {
    %c0_i32 = arith.constant 0 : i32
    %c0_i32_0 = arith.constant 0 : i32
    return %arg0, %c0_i32 : i32, i32
  }
  func.func @transform_2(%arg0: i32) -> (i32, i32) {
    %c0_i32 = arith.constant 0 : i32
    %c0_i32_0 = arith.constant 0 : i32
    return %arg0, %c0_i32 : i32, i32
  }
  func.func @transform_3(%arg0: i32) -> (i32, i32) {
    %c0_i32 = arith.constant 0 : i32
    %c0_i32_0 = arith.constant 0 : i32
    return %arg0, %c0_i32 : i32, i32
  }
  func.func @transform_4(%arg0: i32) -> (i32, i32) {
    %c0_i32 = arith.constant 0 : i32
    %c0_i32_0 = arith.constant 0 : i32
    return %arg0, %c0_i32 : i32, i32
  }
}

</mosaic_0001>

<bundles_post_ra>
// kernel: tpu_custom_call.1
= control target key start
LH: loop header
LB: loop body
LE: loop exit
PB: predicated region body
PF: predicated region fallthrough
CT: control target
= control target key end

     0   :  { %9 = vsyncpa [#allocation3], 0  ;;  %s230_s0 = inlined_call_operand.hbm [shape: f32[8,128], index: 0, kind: input, shape index: {}]   ;;  %s231_s1 = inlined_call_operand.hbm [shape: f32[8,128], index: 1, kind: input, shape index: {}]   ;;  %s232_s2 = inlined_call_operand.hbm [shape: f32[8,128], index: 2, kind: input, shape index: {}]   ;;  %s233_s3 = inlined_call_operand.hbm [shape: f32[8,128], index: 3, kind: input, shape index: {}]   ;;  %s234_s4 = inlined_call_operand.vmem [shape: f32[8,1], index: 4, kind: output, shape index: {}]  }
   0x1   :  { %10 = vsyncpa [#allocation5], 0 }
   0x2   :  { %11 = vsyncpa [#allocation8], 0  ;;  %s186_s15 = smov [#allocation4]   ;;  %s187_s17 = smov [#allocation2]  }
   0x3   :  { %s28_s16 = sshll.u32 %s186_s15, 4  ;;  %s18_s18 = sshll.u32 %s187_s17, 4  ;;  %s29_s16 = int_to_ptr.vmem [resolvable:$true] %s28_s16  ;;  %s19_s18 = int_to_ptr.vmem [resolvable:$true] %s18_s18 }
   0x4   :  { %s108_s19 = scalar_lea.vmem %s29_s16, 128  ;;  %p113_p1 = scmp.lt.s32.totalorder %s29_s16, %s29_s16 }
   0x5   :  { %p109_p0 = scmp.ne.s32.totalorder %s29_s16, %s108_s19  ;;  %p114_p2 = scmp.lt.s32.totalorder %s108_s19, %s108_s19 }
   0x7   :  { %p115_p3 = por %p114_p2, %p113_p1 }
   0x9   :  { %p116_p4 = pnand %p115_p3, %p109_p0 }
   0xb   :  { %119 = shalt.err (!%p116_p4)
}
   0xc   :  { %31 = dma.hbm_to_vmem [thread:$0]  %s231_s1, 128, %s29_s16, [#allocation5]  }
   0xd   :  { %s128_s22 = scalar_lea.vmem %s19_s18, 128  ;;  %p133_p6 = scmp.lt.s32.totalorder %s19_s18, %s19_s18 }
   0xe   :  { %p129_p5 = scmp.ne.s32.totalorder %s19_s18, %s128_s22  ;;  %p134_p7 = scmp.lt.s32.totalorder %s128_s22, %s128_s22 }
  0x10   :  { %p135_p8 = por %p134_p7, %p133_p6 }
  0x12   :  { %p136_p9 = pnand %p135_p8, %p129_p5 }
  0x14   :  { %139 = shalt.err (!%p136_p9)
}
  0x15   :  { %21 = dma.hbm_to_vmem [thread:$0]  %s230_s0, 128, %s19_s18, [#allocation3]  }
  0x16   :  { %s188_s25 = smov [#allocation6]   ;;  %s189_s27 = smov [#allocation7]  }
  0x17   :  { %s38_s26 = sshll.u32 %s188_s25, 4  ;;  %s48_s28 = sshll.u32 %s189_s27, 4  ;;  %s39_s26 = int_to_ptr.vmem [resolvable:$true] %s38_s26  ;;  %s49_s28 = int_to_ptr.vmem [resolvable:$true] %s48_s28 }
  0x18   :  { %s148_s29 = scalar_lea.vmem %s39_s26, 128  ;;  %p153_p11 = scmp.lt.s32.totalorder %s39_s26, %s39_s26 }
  0x19   :  { %p149_p10 = scmp.ne.s32.totalorder %s39_s26, %s148_s29  ;;  %p154_p12 = scmp.lt.s32.totalorder %s148_s29, %s148_s29 }
  0x1b   :  { %p155_p13 = por %p154_p12, %p153_p11 }
  0x1d   :  { %p156_p0 = pnand %p155_p13, %p149_p10 }
  0x1f   :  { %159 = shalt.err (!%p156_p0)
}
  0x20   :  { %41 = dma.hbm_to_vmem [thread:$0]  %s232_s2, 128, %s39_s26, [#allocation5]  }
  0x21   :  { %s168_s5 = scalar_lea.vmem %s49_s28, 128  ;;  %p173_p2 = scmp.lt.s32.totalorder %s49_s28, %s49_s28 }
  0x22   :  { %p169_p1 = scmp.ne.s32.totalorder %s49_s28, %s168_s5  ;;  %p174_p3 = scmp.lt.s32.totalorder %s168_s5, %s168_s5 }
  0x24   :  { %p175_p4 = por %p174_p3, %p173_p2 }
  0x26   :  { %p176_p5 = pnand %p175_p4, %p169_p1 }
  0x28   :  { %179 = shalt.err (!%p176_p5)
}
  0x29   :  { %51 = dma.hbm_to_vmem [thread:$0]  %s233_s3, 128, %s49_s28, [#allocation8]  }
  0x2a   :  { %180 = dma.done.wait [#allocation3], 128  }
  0x2b   :  { %181 = vsyncadd [#allocation3], 4294967168 }
  0x2c   :  { %182 = dma.done.wait [#allocation5], 256  }
  0x2d   :  { %183 = vsyncadd [#allocation5], 4294967040 }
  0x2e   :  { %184 = dma.done.wait [#allocation8], 128  }
  0x2f   :  { %185 = vsyncadd [#allocation8], 4294967168  ;;  %v64_v0 = vld [vmem:[#allocation2] sm:$0xff]  ;;  %v65_v1 = vld [vmem:[#allocation4] sm:$0xff]  ;;  %vm85_vm0 = vcmask 7168  }
  0x30   :  { %v66_v2 = vld [vmem:[#allocation6] sm:$0xff]  ;;  %v73_v3 = vmul.f32 %v64_v0, %v64_v0  ;;  %v68_v5 = vld [vmem:[#allocation7] sm:$0xff] }
  0x31   :  { %v67_v4 = vadd.f32 %v66_v2, %v65_v1 }
  0x32   :  { %74 = vadd.xlane.f32.xlu0 %v73_v3 }
  0x33   :  { %v69_v6 = vadd.f32 %v68_v5, %v67_v4 }
  0x35   :  { %v76_v7 = vmul.f32 %v69_v6, %v69_v6  ;;  %v70_v8 = vmul.f32 %v69_v6, %v64_v0 }
  0x37   :  { %77 = vadd.xlane.f32.xlu0 %v76_v7  ;;  %71 = vadd.xlane.f32.xlu1 %v70_v8 }
  0xbb   :  { %v75_v9 = vpop.xlane.xlu0 %74 }
  0xbc   :  { %v79_v11 = vmax.f32 %v75_v9, 1e-16 }
  0xc0   :  { %v78_v10 = vpop.xlane.xlu0 %77  ;;  %v72_v14 = vpop.xlane.xlu1 %71 }
  0xc1   :  { %v80_v12 = vmax.f32 %v78_v10, 1e-16  ;;  %v83_v15 = vand.u32 2147483647, %v72_v14 }
  0xc3   :  { %v81_v13 = vmul.f32 %v80_v12, %v79_v11 }
  0xc5   :  { %98 = vrsqrt.f32 %v81_v13 }
  0xd2   :  { %v99_v16 = vpop.eup %98 }
  0xd3   :  { %v84_v17 = vmul.f32 %v99_v16, %v83_v15 }
  0xd5   :  { %86 = vst.msk [vmem:[%s234_s4] sm:$0xff] %vm85_vm0, %v84_v17 }
  0xd6   :  { %91 = vsyncpa [#allocation3], 1 }
  0xd7   :  { %92 = vsyncpa [#allocation5], 1 }
  0xd8   :  { %93 = vsyncpa [#allocation8], 1 }

</bundles_post_ra>
